<compile_context>
chip_gen: v5e
topology: v5e:2x2
jax: 0.10.0
libtpu: 0.0.40
codegen_flags: <defaults>
</compile_context>

<pallas_src>
import jax
import jax.numpy as jnp
from jax.experimental import pallas as pl
from jax.experimental.pallas import tpu as pltpu

_LANE = 128      # vreg lane width (last dim)
_SUBLANE = 8     # vreg sublane count (second-minor dim)
_NEG_BIG = -1e30  # "minus infinity" for padded logit rows (finite => no inf-inf)


def _round_up(n, m):
    return ((n + m - 1) // m) * m


def _make_generator_kernel(n_layers):
    """Kernel args: (x_t, w0, b0, w1, b1, ..., w_{L-1}, b_{L-1}, out).

    Feature-major layout:
      x_t tile : (in0_pad,  tm)   -- batch tile on lanes
      w_i      : (out_pad, in_pad)  (native PyTorch (out, in), zero-padded)
      b_i      : (out_pad, 1)       (last layer's padded rows = -1e30)
      out tile : (outL_pad, tm)
    Padded feature rows stay exactly 0 through every hidden layer (zero weight
    rows/cols, zero bias) and become -1e30 logits at the last layer, so the
    softmax over the sublane axis is unaffected.
    """

    def kernel(*refs):
        x_ref = refs[0]
        out_ref = refs[-1]
        params = refs[1:-1]

        h = x_ref[...]  # (in0_pad, tm), f32
        for i in range(n_layers):
            w = params[2 * i][...]        # (out_pad, in_pad)
            b = params[2 * i + 1][...]    # (out_pad, 1) -> lane-broadcast
            h = jnp.dot(w, h, preferred_element_type=jnp.float32) + b
            if i < n_layers - 1:
                # LeakyReLU(negative_slope=0.2)
                h = jnp.where(h > 0, h, 0.2 * h)

        # Numerically-stable softmax over features (sublane axis).
        m = jnp.max(h, axis=0, keepdims=True)
        e = jnp.exp(h - m)
        denom = jnp.sum(e, axis=0, keepdims=True)            # >= 1, never 0
        inv = pl.reciprocal(denom, approx=True)               # EUP vrcp
        inv = inv * (2.0 - denom * inv)                        # Newton -> ~f32 exact
        out_ref[...] = (e * inv).astype(out_ref.dtype)

    return kernel


def prepare_generator_params(weights, biases):
    """Pad the raw params ONCE for the feature-major kernel.

    weights[i]: (out_i, in_i) (PyTorch layout, kept as-is, zero-padded to
                multiples of 8 on both dims)
    biases[i] : (1, out_i)   -> reshaped to (out_pad, 1); the LAST layer's
                padded rows get -1e30 so padded logits vanish in the softmax.

    Returns (flat_params, n_out) where flat_params = [w0,b0,w1,b1,...] and
    n_out is the true (unpadded) output width.
    """
    n_layers = len(weights)
    flat = []
    for i, (w, b) in enumerate(zip(weights, biases)):
        out_d, in_d = w.shape
        out_p = _round_up(out_d, _SUBLANE)
        in_p = _round_up(in_d, _SUBLANE)
        w_p = jnp.pad(w.astype(jnp.float32),
                      ((0, out_p - out_d), (0, in_p - in_d)))
        pad_val = _NEG_BIG if i == n_layers - 1 else 0.0
        b_t = jnp.transpose(b.astype(jnp.float32))            # (out_d, 1)
        b_p = jnp.pad(b_t, ((0, out_p - out_d), (0, 0)),
                      constant_values=pad_val)
        flat.extend([w_p, b_p])
    return tuple(flat), weights[-1].shape[0]


def generator_net_forward(x, prepared, *, block_batch=2048):
    """x: (batch, n_classes) f32. prepared: output of prepare_generator_params.

    Returns softmax probabilities of shape (batch, n_out) — identical
    semantics to GeneratorNet.forward.
    """
    flat_params, n_out = prepared
    n_layers = len(flat_params) // 2
    in0_p = flat_params[0].shape[1]       # padded input feature dim
    outL_p = flat_params[-2].shape[0]     # padded output feature dim
    batch, n_in = x.shape

    # --- batch tiling (lane axis): tm is a multiple of 128 ---------------
    batch_128 = _round_up(batch, _LANE)
    tm = min(_round_up(block_batch, _LANE), batch_128)
    # Keep >= 2 grid steps when the batch allows it, so the "parallel" batch
    # axis can be sharded across v7x's two TensorCores (no-op on v5e/v6e,
    # per-step overhead ~0.35 us is negligible at these tile sizes).
    if batch_128 >= 2 * _LANE:
        tm = min(tm, max(_LANE, (batch_128 // 2) // _LANE * _LANE))
    batch_p = _round_up(batch_128, tm)
    grid = (batch_p // tm,)

    # --- host-side layout plumbing: transpose x to feature-major ---------
    # Only batch*n_in*4 bytes (unpadded) — ~16x less traffic than the old
    # pad-to-128 path; padded batch columns / feature rows are zeros.
    xt = jnp.transpose(x.astype(jnp.float32))                 # (n_in, batch)
    xt = jnp.pad(xt, ((0, in0_p - n_in), (0, batch_p - batch)))

    # x: tiled over the batch (lane) axis. Params: full-array blocks with a
    # constant index_map -> VMEM-resident across all batch tiles.
    in_specs = [pl.BlockSpec((in0_p, tm), lambda i: (0, i))]
    for p in flat_params:
        in_specs.append(pl.BlockSpec(p.shape, lambda i: (0, 0)))

    out_p_arr = pl.pallas_call(
        _make_generator_kernel(n_layers),
        out_shape=jax.ShapeDtypeStruct((outL_p, batch_p), jnp.float32),
        grid=grid,
        in_specs=in_specs,
        out_specs=pl.BlockSpec((outL_p, tm), lambda i: (0, i)),
        compiler_params=pltpu.CompilerParams(
            dimension_semantics=("parallel",)),
    )(xt, *flat_params)

    # Strip feature/batch padding and return batch-major probabilities.
    return jnp.transpose(out_p_arr[:n_out, :batch])


def init_generator_params(key, n_classes, n_hidden_layers, n_hidden_features):
    """Deterministic init mirroring nn.Linear defaults (+/- 1/sqrt(fan_in)).

    Layer shapes follow GeneratorNet.__init__:
      layer 0:            n_classes         -> n_hidden_features
      layers 1..L-2:      n_hidden_features -> n_hidden_features
      layer L-1 (last):   n_hidden_features -> n_classes
    """
    weights, biases = [], []
    n_in = n_classes
    n_out = n_hidden_features
    for i in range(n_hidden_layers):
        key, kw, kb = jax.random.split(key, 3)
        bound = 1.0 / jnp.sqrt(jnp.float32(n_in))
        w = jax.random.uniform(kw, (n_out, n_in), jnp.float32, -bound, bound)
        b = jax.random.uniform(kb, (1, n_out), jnp.float32, -bound, bound)
        weights.append(w)
        biases.append(b)
        n_in = n_out
        if i + 2 == n_hidden_layers:
            n_out = n_classes
    return weights, biases


def _reference_forward(x, weights, biases):
    """Pure-JAX reference of the PyTorch forward pass."""
    h = x
    n_layers = len(weights)
    for i, (w, b) in enumerate(zip(weights, biases)):
        h = h @ w.T + b
        if i < n_layers - 1:
            h = jnp.where(h > 0, h, 0.2 * h)
    return jax.nn.softmax(h, axis=1)


if __name__ == "__main__":
    n_classes = 10          # not a multiple of 8 -> exercises sublane padding
    n_hidden_layers = 3
    n_hidden_features = 32
    batch = 4

    key = jax.random.PRNGKey(0)
    key, kx = jax.random.split(key)
    x = jax.random.normal(kx, (batch, n_classes), jnp.float32)

    weights, biases = init_generator_params(
        key, n_classes, n_hidden_layers, n_hidden_features
    )

    prepared = prepare_generator_params(weights, biases)  # one-time prep
    out = generator_net_forward(x, prepared)
    out = jax.block_until_ready(out)

    ref = _reference_forward(x, weights, biases)
    assert out.shape == (batch, n_classes)
    assert jnp.allclose(out, ref, atol=1e-5, rtol=1e-5)
    # Softmax rows sum to 1.
    assert jnp.allclose(jnp.sum(out, axis=1), jnp.ones((batch,)), atol=1e-5)

    print("KERNEL_OK")
</pallas_src>

<mosaic_0001>
module attributes {stable_mosaic.version = 11 : i64} {
  func.func @kernel(%arg0: i32, %arg1: memref<16x128xf32, #tpu.memory_space<vmem>>, %arg2: memref<32x16xf32, #tpu.memory_space<vmem>>, %arg3: memref<32x1xf32, #tpu.memory_space<vmem>>, %arg4: memref<32x32xf32, #tpu.memory_space<vmem>>, %arg5: memref<32x1xf32, #tpu.memory_space<vmem>>, %arg6: memref<16x32xf32, #tpu.memory_space<vmem>>, %arg7: memref<16x1xf32, #tpu.memory_space<vmem>>, %arg8: memref<16x128xf32, #tpu.memory_space<vmem>>) attributes {dimension_semantics = [#tpu.dimension_semantics<parallel>], iteration_bounds = array<i64: 1>, scalar_prefetch = 0 : i64, scratch_operands = 0 : i64, tpu.core_type = #tpu.core_type<tc>, window_params = [{transform_indices = @transform_0, window_bounds = array<i64: 16, 128>}, {pipeline_mode = #tpu.pipeline_mode<synchronous>, transform_indices = @transform_1, window_bounds = array<i64: 32, 16>}, {pipeline_mode = #tpu.pipeline_mode<synchronous>, transform_indices = @transform_2, window_bounds = array<i64: 32, 1>}, {pipeline_mode = #tpu.pipeline_mode<synchronous>, transform_indices = @transform_3, window_bounds = array<i64: 32, 32>}, {pipeline_mode = #tpu.pipeline_mode<synchronous>, transform_indices = @transform_4, window_bounds = array<i64: 32, 1>}, {pipeline_mode = #tpu.pipeline_mode<synchronous>, transform_indices = @transform_5, window_bounds = array<i64: 16, 32>}, {pipeline_mode = #tpu.pipeline_mode<synchronous>, transform_indices = @transform_6, window_bounds = array<i64: 16, 1>}, {transform_indices = @transform_7, window_bounds = array<i64: 16, 128>}]} {
    %c0 = arith.constant 0 : index
    %c0_0 = arith.constant 0 : index
    %0 = vector.load %arg1[%c0, %c0_0] : memref<16x128xf32, #tpu.memory_space<vmem>>, vector<16x128xf32>
    %c0_1 = arith.constant 0 : index
    %c0_2 = arith.constant 0 : index
    %1 = vector.load %arg2[%c0_1, %c0_2] : memref<32x16xf32, #tpu.memory_space<vmem>>, vector<32x16xf32>
    %c0_3 = arith.constant 0 : index
    %c0_4 = arith.constant 0 : index
    %2 = vector.load %arg3[%c0_3, %c0_4] : memref<32x1xf32, #tpu.memory_space<vmem>>, vector<32x1xf32>
    %cst = arith.constant dense<0.000000e+00> : vector<32x128xf32>
    %3 = tpu.matmul %1, %0, %cst {dimension_numbers = #tpu.dot_dimension_numbers<[1], [0], [0], [1], [0, 0, 1, 1], [], []>} : vector<32x16xf32>, vector<16x128xf32>, vector<32x128xf32> -> vector<32x128xf32>
    %4 = vector.broadcast %2 : vector<32x1xf32> to vector<32x128xf32>
    %5 = arith.addf %3, %4 : vector<32x128xf32>
    %cst_5 = arith.constant 0.000000e+00 : f32
    %6 = vector.broadcast %cst_5 : f32 to vector<32x128xf32>
    %7 = arith.cmpf ogt, %5, %6 : vector<32x128xf32>
    %cst_6 = arith.constant 2.000000e-01 : f32
    %8 = vector.broadcast %cst_6 : f32 to vector<32x128xf32>
    %9 = arith.mulf %8, %5 : vector<32x128xf32>
    %10 = arith.select %7, %5, %9 : vector<32x128xi1>, vector<32x128xf32>
    %c0_7 = arith.constant 0 : index
    %c0_8 = arith.constant 0 : index
    %11 = vector.load %arg4[%c0_7, %c0_8] : memref<32x32xf32, #tpu.memory_space<vmem>>, vector<32x32xf32>
    %c0_9 = arith.constant 0 : index
    %c0_10 = arith.constant 0 : index
    %12 = vector.load %arg5[%c0_9, %c0_10] : memref<32x1xf32, #tpu.memory_space<vmem>>, vector<32x1xf32>
    %cst_11 = arith.constant dense<0.000000e+00> : vector<32x128xf32>
    %13 = tpu.matmul %11, %10, %cst_11 {dimension_numbers = #tpu.dot_dimension_numbers<[1], [0], [0], [1], [0, 0, 1, 1], [], []>} : vector<32x32xf32>, vector<32x128xf32>, vector<32x128xf32> -> vector<32x128xf32>
    %14 = vector.broadcast %12 : vector<32x1xf32> to vector<32x128xf32>
    %15 = arith.addf %13, %14 : vector<32x128xf32>
    %cst_12 = arith.constant 0.000000e+00 : f32
    %16 = vector.broadcast %cst_12 : f32 to vector<32x128xf32>
    %17 = arith.cmpf ogt, %15, %16 : vector<32x128xf32>
    %cst_13 = arith.constant 2.000000e-01 : f32
    %18 = vector.broadcast %cst_13 : f32 to vector<32x128xf32>
    %19 = arith.mulf %18, %15 : vector<32x128xf32>
    %20 = arith.select %17, %15, %19 : vector<32x128xi1>, vector<32x128xf32>
    %c0_14 = arith.constant 0 : index
    %c0_15 = arith.constant 0 : index
    %21 = vector.load %arg6[%c0_14, %c0_15] : memref<16x32xf32, #tpu.memory_space<vmem>>, vector<16x32xf32>
    %c0_16 = arith.constant 0 : index
    %c0_17 = arith.constant 0 : index
    %22 = vector.load %arg7[%c0_16, %c0_17] : memref<16x1xf32, #tpu.memory_space<vmem>>, vector<16x1xf32>
    %cst_18 = arith.constant dense<0.000000e+00> : vector<16x128xf32>
    %23 = tpu.matmul %21, %20, %cst_18 {dimension_numbers = #tpu.dot_dimension_numbers<[1], [0], [0], [1], [0, 0, 1, 1], [], []>} : vector<16x32xf32>, vector<32x128xf32>, vector<16x128xf32> -> vector<16x128xf32>
    %24 = vector.broadcast %22 : vector<16x1xf32> to vector<16x128xf32>
    %25 = arith.addf %23, %24 : vector<16x128xf32>
    %cst_19 = arith.constant dense<0xFF800000> : vector<128xf32>
    %26 = vector.multi_reduction <maximumf>, %25, %cst_19 [0] : vector<16x128xf32> to vector<128xf32>
    %27 = vector.shape_cast %26 : vector<128xf32> to vector<1x128xf32>
    %28 = vector.broadcast %27 : vector<1x128xf32> to vector<16x128xf32>
    %29 = arith.subf %25, %28 : vector<16x128xf32>
    %30 = math.exp %29 : vector<16x128xf32>
    %cst_20 = arith.constant dense<0.000000e+00> : vector<128xf32>
    %31 = vector.multi_reduction <add>, %30, %cst_20 [0] : vector<16x128xf32> to vector<128xf32>
    %32 = vector.shape_cast %31 : vector<128xf32> to vector<1x128xf32>
    %33 = tpu.reciprocal %32 {approx = true} : vector<1x128xf32> -> vector<1x128xf32>
    %34 = arith.mulf %32, %33 : vector<1x128xf32>
    %cst_21 = arith.constant 2.000000e+00 : f32
    %35 = vector.broadcast %cst_21 : f32 to vector<1x128xf32>
    %36 = arith.subf %35, %34 : vector<1x128xf32>
    %37 = arith.mulf %33, %36 : vector<1x128xf32>
    %38 = vector.broadcast %37 : vector<1x128xf32> to vector<16x128xf32>
    %39 = arith.mulf %30, %38 : vector<16x128xf32>
    %c0_22 = arith.constant 0 : index
    %c0_23 = arith.constant 0 : index
    %40 = vector.load %arg8[%c0_22, %c0_23] : memref<16x128xf32, #tpu.memory_space<vmem>>, vector<16x128xf32>
    tpu.vector_store %arg8[%c0_22, %c0_23], %39 {strides = array<i32>} : memref<16x128xf32, #tpu.memory_space<vmem>>, vector<16x128xf32>,
    return
  }
  func.func @transform_0(%arg0: i32) -> (i32, i32) {
    %c0_i32 = arith.constant 0 : i32
    %c0_i32_0 = arith.constant 0 : i32
    return %c0_i32, %arg0 : i32, i32
  }
  func.func @transform_1(%arg0: i32) -> (i32, i32) {
    %c0_i32 = arith.constant 0 : i32
    %c0_i32_0 = arith.constant 0 : i32
    %c0_i32_1 = arith.constant 0 : i32
    return %c0_i32, %c0_i32_0 : i32, i32
  }
  func.func @transform_2(%arg0: i32) -> (i32, i32) {
    %c0_i32 = arith.constant 0 : i32
    %c0_i32_0 = arith.constant 0 : i32
    %c0_i32_1 = arith.constant 0 : i32
    return %c0_i32, %c0_i32_0 : i32, i32
  }
  func.func @transform_3(%arg0: i32) -> (i32, i32) {
    %c0_i32 = arith.constant 0 : i32
    %c0_i32_0 = arith.constant 0 : i32
    %c0_i32_1 = arith.constant 0 : i32
    return %c0_i32, %c0_i32_0 : i32, i32
  }
  func.func @transform_4(%arg0: i32) -> (i32, i32) {
    %c0_i32 = arith.constant 0 : i32
    %c0_i32_0 = arith.constant 0 : i32
    %c0_i32_1 = arith.constant 0 : i32
    return %c0_i32, %c0_i32_0 : i32, i32
  }
  func.func @transform_5(%arg0: i32) -> (i32, i32) {
    %c0_i32 = arith.constant 0 : i32
    %c0_i32_0 = arith.constant 0 : i32
    %c0_i32_1 = arith.constant 0 : i32
    return %c0_i32, %c0_i32_0 : i32, i32
  }
  func.func @transform_6(%arg0: i32) -> (i32, i32) {
    %c0_i32 = arith.constant 0 : i32
    %c0_i32_0 = arith.constant 0 : i32
    %c0_i32_1 = arith.constant 0 : i32
    return %c0_i32, %c0_i32_0 : i32, i32
  }
  func.func @transform_7(%arg0: i32) -> (i32, i32) {
    %c0_i32 = arith.constant 0 : i32
    %c0_i32_0 = arith.constant 0 : i32
    return %c0_i32, %arg0 : i32, i32
  }
}

</mosaic_0001>

<bundles_post_ra>
// kernel: tpu_custom_call.1
= control target key start
LH: loop header
LB: loop body
LE: loop exit
PB: predicated region body
PF: predicated region fallthrough
CT: control target
= control target key end

     0   :  { %v337_v3 = vmov 0   ;;  %vm57_vm0 = vcmask 130048   ;;  %s460_s0 = inlined_call_operand.vmem [shape: f32[16,128], index: 0, kind: input, shape index: {}]   ;;  %s461_s1 = inlined_call_operand.vmem [shape: f32[32,16], index: 1, kind: input, shape index: {}]   ;;  %s462_s2 = inlined_call_operand.vmem [shape: f32[32,1], index: 2, kind: input, shape index: {}]   ;;  %s463_s3 = inlined_call_operand.vmem [shape: f32[32,32], index: 3, kind: input, shape index: {}]   ;;  %s464_s4 = inlined_call_operand.vmem [shape: f32[32,1], index: 4, kind: input, shape index: {}]   ;;  %s465_s5 = inlined_call_operand.vmem [shape: f32[16,32], index: 5, kind: input, shape index: {}]   ;;  %s466_s6 = inlined_call_operand.vmem [shape: f32[16,1], index: 6, kind: input, shape index: {}]   ;;  %s467_s7 = inlined_call_operand.hbm [shape: f32[16,128], index: 7, kind: output, shape index: {}]  }
   0x1   :  { %v28_v0 = vld [vmem:[%s460_s0 + $0x8] sm:$0xff]  ;;  %v36_v1 = vld [vmem:[%s462_s2 + $0x18] sm:$0xff]  ;;  %v27_v2 = vld [vmem:[%s460_s0] sm:$0xff]  ;;  %302 = vset.pattern.permute.xlu0 %v337_v3  ;;  %303 = vset.pattern.permute.xlu1 %v337_v3 }
   0x2   :  { %84 = vmatpush.msra.mxu0 %v28_v0  ;;  %v29_v4 = vld [vmem:[%s461_s1] sm:$0xff]  ;;  %v34_v5 = vld [vmem:[%s462_s2 + $0x8] sm:$0xff]  ;;  %54 = vperm.xlu0 %302, %v36_v1   ;;  %v32_v6 = vld [vmem:[%s461_s1 + $0x18] sm:$0xff] }
   0x3   :  { %44 = vperm.xlu1 %303, %v34_v5   ;;  %292 = vmatpush.msra.mxu1 %v28_v0 }
   0x4   :  { %85 = vmatpush.msra.mxu0 %v27_v2 }
   0x5   :  { %282 = vmatmul.msk.f32.vlgmr.msra.gmra.mxu0 %vm57_vm0, %v29_v4 }
   0x6   :  { %12 = vsyncpa [#allocation3], 0  ;;  %304 = vset.pattern.permute.xlu2 %v337_v3  ;;  %293 = vmatpush.msra.mxu1 %v27_v2  ;;  %v35_v7 = vld [vmem:[%s462_s2 + $0x10] sm:$0xff]  ;;  %v33_v8 = vld [vmem:[%s462_s2] sm:$0xff]  ;;  %vm139_vm5 = vcmask 261120   ;;  %s270_s18 = sshll.u32 %s467_s7, 4  ;;  %s271_s18 = int_to_ptr.hbm [resolvable:$true] %s270_s18 }
   0x7   :  { %285 = vmatmul.msk.f32.vlgmr.msra.gmra.mxu1 %vm57_vm0, %v32_v6  ;;  %v30_v9 = vld [vmem:[%s461_s1 + $0x8] sm:$0xff]  ;;  %v115_v11 = vld [vmem:[%s464_s4] sm:$0xff]  ;;  %v31_v12 = vld [vmem:[%s461_s1 + $0x10] sm:$0xff]  ;;  %s339_s19 = smov 128   ;;  %s340_s20 = smov 8  }
   0x8   :  { %v116_v10 = vld [vmem:[%s464_s4 + $0x8] sm:$0xff]  ;;  %v118_v22 = vld [vmem:[%s464_s4 + $0x18] sm:$0xff]  ;;  %v117_v29 = vld [vmem:[%s464_s4 + $0x10] sm:$0xff] }
   0x9   :  { %v196_v13 = vld [vmem:[%s466_s6 + $0x8] sm:$0xff]  ;;  %136 = vperm.xlu2 %304, %v118_v22   ;;  %v111_v35 = vld [vmem:[%s463_s3] sm:$0xff]  ;;  %v113_v39 = vld [vmem:[%s463_s3 + $0x10] sm:$0xff] }
   0xa   :  { %49 = vperm.xlu0 %302, %v35_v7   ;;  %v112_v36 = vld [vmem:[%s463_s3 + $0x8] sm:$0xff]  ;;  %v195_v38 = vld [vmem:[%s466_s6] sm:$0xff]  ;;  %v114_v40 = vld [vmem:[%s463_s3 + $0x18] sm:$0xff] }
   0xb   :  { %39 = vperm.xlu1 %303, %v33_v8   ;;  %v193_v60 = vld [vmem:[%s465_s5] sm:$0xff]  ;;  %v194_v62 = vld [vmem:[%s465_s5 + $0x8] sm:$0xff]  ;;  %s338_s5 = smov [#allocation2]  }
   0xc   :  { %s268_s15 = sshll.u32 %s338_s5, 4  ;;  %s269_s15 = int_to_ptr.vmem [resolvable:$true] %s268_s15 }
   0xd   :  { %283 = vmatmul.msk.f32.gmra.mxu0 %vm57_vm0, %v30_v9 }
  0x11   :  { %131 = vperm.xlu2 %304, %v117_v29  }
  0x12   :  { %126 = vperm.xlu0 %302, %v116_v10  }
  0x13   :  { %121 = vperm.xlu1 %303, %v115_v11  }
  0x15   :  { %284 = vmatmul.msk.f32.gmra.mxu0 %vm57_vm0, %v31_v12 }
  0x19   :  { %199 = vperm.xlu2 %304, %v195_v38  }
  0x1a   :  { %204 = vperm.xlu0 %302, %v196_v13  }
  0x63   :  { %v137_v42 = vpop.permute.xlu2 %136 }
  0x6b   :  { %v132_v44 = vpop.permute.xlu2 %131 }
  0x73   :  { %v200_v1 = vpop.permute.xlu2 %199 }
  0x74   :  { %v55_v15 = vpop.permute.xlu0 %54 }
  0x75   :  { %v45_v17 = vpop.permute.xlu1 %44 }
  0x7c   :  { %v50_v25 = vpop.permute.xlu0 %49 }
  0x7d   :  { %v40_v23 = vpop.permute.xlu1 %39 }
  0x82   :  { %v87_v14 = vpop.f32.mrf.mxu0 }
  0x83   :  { %v88_v27 = vadd.f32 %v87_v14, %v40_v23 }
  0x84   :  { %v96_v16 = vpop.f32.mrf.mxu1  ;;  %v127_v45 = vpop.permute.xlu0 %126 }
  0x85   :  { %v97_v18 = vadd.f32 %v96_v16, %v55_v15  ;;  %v103_v33 = vmul.f32 0.2, %v88_v27  ;;  %vm99_vm4 = vcmp.gt.f32.partialorder %v88_v27, 0.0  ;;  %v122_v51 = vpop.permute.xlu1 %121 }
  0x87   :  { %vm102_vm1 = vcmp.gt.f32.partialorder %v97_v18, 0.0  ;;  %v106_v19 = vmul.f32 0.2, %v97_v18  ;;  %v107_v37 = vsel %vm99_vm4, %v88_v27, %v103_v33 }
  0x89   :  { %v110_v21 = vsel %vm102_vm1, %v97_v18, %v106_v19 }
  0x8a   :  { %v90_v20 = vpop.f32.mrf.mxu0  ;;  %164 = vmatpush.msrb.mxu1 %v110_v21  ;;  %294 = vmatpush.msra.mxu3 %v110_v21 }
  0x8b   :  { %v91_v24 = vadd.f32 %v90_v20, %v45_v17 }
  0x8c   :  { %v205_v0 = vpop.permute.xlu0 %204 }
  0x8d   :  { %v104_v31 = vmul.f32 0.2, %v91_v24  ;;  %vm100_vm3 = vcmp.gt.f32.partialorder %v91_v24, 0.0 }
  0x8f   :  { %v108_v34 = vsel %vm100_vm3, %v91_v24, %v104_v31 }
  0x92   :  { %v93_v26 = vpop.f32.mrf.mxu0 }
  0x93   :  { %v94_v28 = vadd.f32 %v93_v26, %v50_v25 }
  0x95   :  { %vm101_vm2 = vcmp.gt.f32.partialorder %v94_v28, 0.0  ;;  %v105_v30 = vmul.f32 0.2, %v94_v28 }
  0x97   :  { %v109_v32 = vsel %vm101_vm2, %v94_v28, %v105_v30 }
  0x98   :  { %165 = vmatpush.msrb.mxu1 %v109_v32  ;;  %295 = vmatpush.msra.mxu3 %v109_v32 }
  0x9a   :  { %166 = vmatpush.msrb.mxu1 %v108_v34  ;;  %296 = vmatpush.msra.mxu3 %v108_v34 }
  0x9c   :  { %167 = vmatpush.msrb.mxu1 %v107_v37  ;;  %297 = vmatpush.msra.mxu3 %v107_v37 }
  0x9d   :  { %286 = vmatmul.msk.f32.vlgmr.msrb.gmra.mxu1 %vm139_vm5, %v111_v35  ;;  %287 = vmatmul.msk.f32.vlgmr.msra.gmra.mxu3 %vm139_vm5, %v112_v36 }
  0xa5   :  { %288 = vmatmul.msk.f32.gmra.mxu3 %vm139_vm5, %v113_v39 }
  0xad   :  { %289 = vmatmul.msk.f32.gmra.mxu3 %vm139_vm5, %v114_v40 }
 0x11a   :  { %v169_v47 = vpop.f32.mrf.mxu1 }
 0x11b   :  { %v170_v52 = vadd.f32 %v169_v47, %v122_v51 }
 0x11d   :  { %v185_v58 = vmul.f32 0.2, %v170_v52  ;;  %vm181_vm9 = vcmp.gt.f32.partialorder %v170_v52, 0.0 }
 0x11f   :  { %v189_v61 = vsel %vm181_vm9, %v170_v52, %v185_v58 }
 0x120   :  { %v172_v41 = vpop.f32.mrf.mxu3 }
 0x121   :  { %v173_v49 = vadd.f32 %v172_v41, %v127_v45 }
 0x123   :  { %v186_v56 = vmul.f32 0.2, %v173_v49  ;;  %vm182_vm8 = vcmp.gt.f32.partialorder %v173_v49, 0.0 }
 0x125   :  { %v190_v59 = vsel %vm182_vm8, %v173_v49, %v186_v56 }
 0x128   :  { %v175_v43 = vpop.f32.mrf.mxu3 }
 0x129   :  { %v176_v46 = vadd.f32 %v175_v43, %v132_v44 }
 0x12b   :  { %v187_v54 = vmul.f32 0.2, %v176_v46  ;;  %vm183_vm7 = vcmp.gt.f32.partialorder %v176_v46, 0.0 }
 0x12d   :  { %v191_v57 = vsel %vm183_vm7, %v176_v46, %v187_v54 }
 0x130   :  { %v178_v48 = vpop.f32.mrf.mxu3 }
 0x131   :  { %v179_v50 = vadd.f32 %v178_v48, %v137_v42 }
 0x133   :  { %vm184_vm6 = vcmp.gt.f32.partialorder %v179_v50, 0.0  ;;  %v188_v53 = vmul.f32 0.2, %v179_v50 }
 0x135   :  { %v192_v55 = vsel %vm184_vm6, %v179_v50, %v188_v53 }
 0x136   :  { %225 = vmatpush.msra.mxu2 %v192_v55 }
 0x138   :  { %226 = vmatpush.msra.mxu2 %v191_v57 }
 0x13a   :  { %227 = vmatpush.msra.mxu2 %v190_v59 }
 0x13c   :  { %228 = vmatpush.msra.mxu2 %v189_v61 }
 0x13d   :  { %290 = vmatmul.msk.f32.vlgmr.msra.gmra.mxu2 %vm139_vm5, %v193_v60 }
 0x145   :  { %291 = vmatmul.msk.f32.gmra.mxu2 %vm139_vm5, %v194_v62 }
 0x1c0   :  { %v230_v63 = vpop.f32.mrf.mxu2 }
 0x1c1   :  { %v231_v3 = vadd.f32 %v230_v63, %v200_v1 }
 0x1c8   :  { %v233_v2 = vpop.f32.mrf.mxu2 }
 0x1c9   :  { %v234_v4 = vadd.f32 %v233_v2, %v205_v0 }
 0x1cb   :  { %v236_v5 = vmax.f32 %v231_v3, %v234_v4 }
 0x1cd   :  { %v237_v6 = vrot.slane %v236_v5, 4 }
 0x1cf   :  { %v238_v7 = vmax.f32 %v236_v5, %v237_v6 }
 0x1d1   :  { %v239_v8 = vrot.slane %v238_v7, 2 }
 0x1d3   :  { %v240_v9 = vmax.f32 %v238_v7, %v239_v8 }
 0x1d5   :  { %v241_v10 = vrot.slane %v240_v9, 1 }
 0x1d7   :  { %v242_v11 = vmax.f32 %v240_v9, %v241_v10 }
 0x1d9   :  { %v243_v12 = vsub.f32 %v231_v3, %v242_v11  ;;  %v244_v13 = vsub.f32 %v234_v4, %v242_v11 }
 0x1db   :  { %v245_v14 = vmul.f32 1.442695, %v243_v12  ;;  %v247_v15 = vmul.f32 1.442695, %v244_v13 }
 0x1dd   :  { %305 = vpow2.f32 %v245_v14 }
 0x1de   :  { %307 = vpow2.f32 %v247_v15 }
 0x1e3   :  { %v306_v16 = vpop.eup %305 }
 0x1e4   :  { %v308_v17 = vpop.eup %307 }
 0x1e5   :  { %v249_v18 = vadd.f32 %v308_v17, %v306_v16 }
 0x1e7   :  { %v250_v19 = vrot.slane %v249_v18, 4 }
 0x1e9   :  { %v251_v20 = vadd.f32 %v250_v19, %v249_v18 }
 0x1eb   :  { %v252_v21 = vrot.slane %v251_v20, 2 }
 0x1ed   :  { %v253_v22 = vadd.f32 %v252_v21, %v251_v20 }
 0x1ef   :  { %v254_v23 = vrot.slane %v253_v22, 1 }
 0x1f1   :  { %v255_v24 = vadd.f32 %v254_v23, %v253_v22 }
 0x1f3   :  { %309 = vrcp.f32 %v255_v24 }
 0x1f9   :  { %v310_v25 = vpop.eup %309 }
 0x1fa   :  { %v257_v26 = vmul.f32 %v310_v25, %v255_v24 }
 0x1fc   :  { %v258_v27 = vsub.f32 2.0, %v257_v26 }
 0x1fe   :  { %v259_v28 = vmul.f32 %v310_v25, %v258_v27 }
 0x200   :  { %v261_v29 = vmul.f32 %v308_v17, %v259_v28  ;;  %v260_v30 = vmul.f32 %v306_v16, %v259_v28 }
 0x202   :  { %263 = vst [vmem:[#allocation2 + $0x8] sm:$0xff] %v261_v29 }
 0x203   :  { %262 = vst [vmem:[#allocation2] sm:$0xff] %v260_v30 }
 0x204   :  { %276 = dma.vmem_to_hbm [thread:$0]  %s269_s15, 256, %s271_s18, [#allocation3], %s339_s19, %s339_s19, %s340_s20  }
 0x205   :  { %335 = dma.done.wait [#allocation3], 256  }
 0x206   :  { %336 = vsyncadd [#allocation3], 4294967040 }
 0x207   :  { %281 = vsyncpa [#allocation3], 1 }

</bundles_post_ra>
